<compile_context>
chip_gen: v7x
topology: tpu7x:2x2x1
jax: 0.10.0
libtpu: 0.0.40
codegen_flags: <defaults>
</compile_context>

<pallas_src>
import functools

import jax
import jax.numpy as jnp
from jax import lax
from jax.experimental import pallas as pl
from jax.experimental.pallas import tpu as pltpu


def _round_up(x: int, m: int) -> int:
    return ((x + m - 1) // m) * m


# ---------------------------------------------------------------------------
# Fast path: both embedding tables are small enough to live in VMEM.
# Row lookups are one-hot matmuls on the MXU; no DMAs, no wait loops.
# ---------------------------------------------------------------------------
def _transe_small_kernel(h_ids_ref, r_ids_ref, t_ids_ref,   # (tile_b, 1) i32
                         ent_ref, rel_ref,                    # VMEM-resident tables
                         o_ref):                              # (tile_b, 1) f32
    tb = o_ref.shape[0]

    def lookup(ids_ref, table_ref):
        nrows = table_ref.shape[0]
        ids = ids_ref[...]                                          # (tb, 1) i32
        iota = lax.broadcasted_iota(jnp.int32, (tb, nrows), 1)
        # Compare/select in f32, single cast to the table dtype (v5e: no bf16 VPU).
        onehot = (ids == iota).astype(jnp.float32).astype(table_ref.dtype)
        # Exactly one bf16 table value per output element, f32 accumulation -> exact.
        return jnp.dot(onehot, table_ref[...],
                       preferred_element_type=jnp.float32)          # (tb, D) f32

    h = lookup(h_ids_ref, ent_ref)
    r = lookup(r_ids_ref, rel_ref)
    t = lookup(t_ids_ref, ent_ref)

    diff = h + r - t                                                 # (tb, D) f32
    sq = jnp.sum(diff * diff, axis=-1, keepdims=True)                # lane reduce -> (tb, 1)
    # TODO(synk): add an eps inside sqrt if a custom VJP is ever attached
    # (d/dx sqrt at 0 is infinite when h + r == t).
    o_ref[...] = -jnp.sqrt(sq)


# ---------------------------------------------------------------------------
# Gather path: tables stay in HBM; tile_b rows of E[h], R[r], E[t] are
# row-DMA-gathered per grid step with cross-step double buffering.
# ---------------------------------------------------------------------------
def _transe_gather_kernel(h_ids_ref, r_ids_ref, t_ids_ref,   # SMEM scalar prefetch
                          ent_ref, rel_ref,                    # HBM refs (pl.ANY)
                          o_ref,                               # (tile_b, 1) f32
                          h_buf, r_buf, t_buf, sem,            # scratch
                          *, unroll: int):
    i = pl.program_id(0)
    n = pl.num_programs(0)
    tile_b = h_buf.shape[1]
    slot = i % 2

    def issue(step, s):
        base = step * tile_b

        # Partially unrolled issue loop: 8 rows x 3 streams of descriptor
        # starts per scf.for iteration so scalar loads / address math pipeline.
        @pl.loop(0, tile_b // unroll)
        def _chunk(c):
            row0 = pl.multiple_of(c * unroll, unroll)
            for u in range(unroll):
                row = row0 + u
                h_idx = h_ids_ref[base + row]
                r_idx = r_ids_ref[base + row]
                t_idx = t_ids_ref[base + row]
                pltpu.make_async_copy(ent_ref.at[pl.ds(h_idx, 1), :],
                                      h_buf.at[s, pl.ds(row, 1), :],
                                      sem.at[s, 0]).start()
                pltpu.make_async_copy(rel_ref.at[pl.ds(r_idx, 1), :],
                                      r_buf.at[s, pl.ds(row, 1), :],
                                      sem.at[s, 1]).start()
                pltpu.make_async_copy(ent_ref.at[pl.ds(t_idx, 1), :],
                                      t_buf.at[s, pl.ds(row, 1), :],
                                      sem.at[s, 2]).start()

    # First grid step (sequential grid): prime the current slot.
    @pl.when(i == 0)
    def _prime():
        issue(0, 0)

    # Prefetch the next tile into the other slot; overlaps this tile's DMAs
    # and compute (ids are fully SMEM-resident via scalar prefetch).
    @pl.when(i + 1 < n)
    def _prefetch_next():
        issue(i + 1, 1 - slot)

    # O(1) aggregate waits: every row copy of a stream shares one DMA
    # semaphore (byte-counted), so a single descriptor sized to the whole slot
    # buffer covers all tile_b row copies.
    pltpu.make_async_copy(h_buf.at[slot], h_buf.at[slot], sem.at[slot, 0]).wait()
    pltpu.make_async_copy(r_buf.at[slot], r_buf.at[slot], sem.at[slot, 1]).wait()
    pltpu.make_async_copy(t_buf.at[slot], t_buf.at[slot], sem.at[slot, 2]).wait()

    # TransE score, f32 math over bf16 storage.  Lane reduction only -- no
    # (tile_b, D) transpose through the XLU.
    h = h_buf[slot].astype(jnp.float32)
    r = r_buf[slot].astype(jnp.float32)
    t = t_buf[slot].astype(jnp.float32)
    diff = h + r - t                                                 # (tile_b, D)
    sq = jnp.sum(diff * diff, axis=-1, keepdims=True)                # (tile_b, 1)
    o_ref[...] = -jnp.sqrt(sq)


def transe_score(heads, relations, tails, entity_emb, relation_emb, *,
                 tile_b=1024, force_gather=False):
    """Fused TransE scoring: score = -||E[h] + R[r] - E[t]||_2.  Returns (B, 1) f32."""
    B = int(heads.shape[0])
    E, D = entity_emb.shape
    R, Dr = relation_emb.shape
    assert D == Dr, "entity / relation embedding dims must match"
    assert D % 128 == 0, "embedding dim must be a multiple of 128 (TPU lanes)"

    itemsize = jnp.dtype(entity_emb.dtype).itemsize

    # Small tables -> keep them fully VMEM-resident and skip the DMA gather
    # (one-hot lookup cost is O(tile_b * rows * D), so also gate on row count).
    small_tables = (E <= 2048 and R <= 2048
                    and (E + R) * D * itemsize <= 8 * 1024 * 1024)
    use_gather = force_gather or not small_tables

    # Tile size: multiple of 128 lanes, no larger than the padded batch.
    tile_b = max(128, (int(tile_b) // 128) * 128)
    if use_gather:
        # Keep the double-buffered gather working set (2 slots x 3 streams)
        # under ~12 MiB so v5e's 16 MiB default scoped-VMEM limit is safe
        # without a vmem_limit_bytes override (v6e/v7x have more headroom).
        max_rows = (12 * 1024 * 1024) // (3 * 2 * D * itemsize)
        tile_b = min(tile_b, max(128, (max_rows // 128) * 128))
    tile_b = min(tile_b, _round_up(B, 128))
    num_tiles = pl.cdiv(B, tile_b)
    Bp = num_tiles * tile_b
    pad = Bp - B

    # Pad ids with 0 (a valid row); padded scores are sliced off below.
    h_ids = jnp.pad(heads.astype(jnp.int32), (0, pad))
    r_ids = jnp.pad(relations.astype(jnp.int32), (0, pad))
    t_ids = jnp.pad(tails.astype(jnp.int32), (0, pad))

    out_shape = jax.ShapeDtypeStruct((Bp, 1), jnp.float32)

    if not use_gather:
        out = pl.pallas_call(
            _transe_small_kernel,
            out_shape=out_shape,
            grid_spec=pltpu.PrefetchScalarGridSpec(
                num_scalar_prefetch=0,
                grid=(num_tiles,),
                in_specs=[
                    pl.BlockSpec((tile_b, 1), lambda i: (i, 0)),   # head ids
                    pl.BlockSpec((tile_b, 1), lambda i: (i, 0)),   # relation ids
                    pl.BlockSpec((tile_b, 1), lambda i: (i, 0)),   # tail ids
                    # Constant-index tables (fetched once, VMEM-resident).
                    pl.BlockSpec((E, D), lambda i: (0, 0)),
                    pl.BlockSpec((R, D), lambda i: (0, 0)),
                ],
                out_specs=pl.BlockSpec((tile_b, 1), lambda i: (i, 0)),
            ),
            compiler_params=pltpu.CompilerParams(
                dimension_semantics=("parallel",)),
        )(h_ids.reshape(Bp, 1), r_ids.reshape(Bp, 1), t_ids.reshape(Bp, 1),
          entity_emb, relation_emb)
    else:
        # One extra tile of id padding so the (runtime-predicated-off) next-tile
        # prefetch traced at the final grid step never forms an OOB SMEM index.
        h_ids_g = jnp.pad(h_ids, (0, tile_b))
        r_ids_g = jnp.pad(r_ids, (0, tile_b))
        t_ids_g = jnp.pad(t_ids, (0, tile_b))

        kernel = functools.partial(_transe_gather_kernel, unroll=8)
        out = pl.pallas_call(
            kernel,
            out_shape=out_shape,
            grid_spec=pltpu.PrefetchScalarGridSpec(
                num_scalar_prefetch=3,                 # h / r / t ids live in SMEM
                grid=(num_tiles,),
                in_specs=[
                    pl.BlockSpec(memory_space=pl.ANY),   # entity table stays in HBM
                    pl.BlockSpec(memory_space=pl.ANY),   # relation table stays in HBM
                ],
                out_specs=pl.BlockSpec((tile_b, 1), lambda i, *_: (i, 0)),
                scratch_shapes=[
                    pltpu.VMEM((2, tile_b, D), entity_emb.dtype),    # head rows (2 slots)
                    pltpu.VMEM((2, tile_b, D), relation_emb.dtype),  # relation rows
                    pltpu.VMEM((2, tile_b, D), entity_emb.dtype),    # tail rows
                    pltpu.SemaphoreType.DMA((2, 3)),                 # [slot, stream]
                ],
            ),
            compiler_params=pltpu.CompilerParams(
                # Cross-step double buffering carries prefetch state between grid
                # steps, so the batch axis must run sequentially on one core.
                dimension_semantics=("arbitrary",)),
        )(h_ids_g, r_ids_g, t_ids_g, entity_emb, relation_emb)

    return out[:B]


class BMKGModelPallas:
    """JAX/Pallas analogue of the BMKG model's compute path (TransE scorer).

    Training-loop / logging / optimizer machinery from the PyTorch base class
    is host-side orchestration and has no kernel equivalent.
    """

    def __init__(self, num_entities: int, num_relations: int, dim: int, key):
        k_e, k_r = jax.random.split(key)
        # bf16 storage halves HBM gather traffic; kernel arithmetic is f32.
        self.entity_emb = (
            jax.random.normal(k_e, (num_entities, dim), jnp.float32) * 0.1
        ).astype(jnp.bfloat16)
        self.relation_emb = (
            jax.random.normal(k_r, (num_relations, dim), jnp.float32) * 0.1
        ).astype(jnp.bfloat16)

    def forward(self, heads, relations, tails, *, tile_b=1024, force_gather=False):
        return transe_score(heads, relations, tails,
                            self.entity_emb, self.relation_emb,
                            tile_b=tile_b, force_gather=force_gather)


if __name__ == "__main__":
    key = jax.random.PRNGKey(0)
    k_model, k_h, k_r, k_t = jax.random.split(key, 4)

    num_entities, num_relations, dim = 64, 16, 128
    batch = 300   # deliberately NOT a multiple of the tile: exercises padding

    model = BMKGModelPallas(num_entities, num_relations, dim, k_model)

    heads = jax.random.randint(k_h, (batch,), 0, num_entities)
    rels = jax.random.randint(k_r, (batch,), 0, num_relations)
    tails = jax.random.randint(k_t, (batch,), 0, num_entities)

    # pure-JAX reference
    h = model.entity_emb[heads].astype(jnp.float32)
    r = model.relation_emb[rels].astype(jnp.float32)
    t = model.entity_emb[tails].astype(jnp.float32)
    ref = -jnp.sqrt(jnp.sum((h + r - t) ** 2, axis=-1, keepdims=True))

    # 1) small-table fast path (VMEM-resident tables, one-hot MXU lookups);
    #    tile_b=128 -> 3-step grid with a padded final tile.
    fast = jax.block_until_ready(model.forward(heads, rels, tails, tile_b=128))
    assert fast.shape == (batch, 1)
    assert jnp.allclose(fast, ref, atol=1e-4, rtol=1e-4), float(
        jnp.max(jnp.abs(fast - ref)))

    # 2) force the HBM row-gather path (double-buffered DMA gather, aggregate
    #    waits, unrolled issue loop) on the same data so the large-table kernel
    #    is exercised end-to-end as well.
    gathered = jax.block_until_ready(
        model.forward(heads, rels, tails, tile_b=128, force_gather=True))
    assert gathered.shape == (batch, 1)
    assert jnp.allclose(gathered, ref, atol=1e-4, rtol=1e-4), float(
        jnp.max(jnp.abs(gathered - ref)))

    print("KERNEL_OK")
</pallas_src>

<mosaic_0001>
module attributes {stable_mosaic.version = 11 : i64} {
  func.func @_transe_small_kernel(%arg0: i32, %arg1: memref<128x1xi32, #tpu.memory_space<vmem>>, %arg2: memref<128x1xi32, #tpu.memory_space<vmem>>, %arg3: memref<128x1xi32, #tpu.memory_space<vmem>>, %arg4: memref<64x128xbf16, #tpu.memory_space<vmem>>, %arg5: memref<16x128xbf16, #tpu.memory_space<vmem>>, %arg6: memref<128x1xf32, #tpu.memory_space<vmem>>) attributes {dimension_semantics = [#tpu.dimension_semantics<parallel>], iteration_bounds = array<i64: 3>, scalar_prefetch = 0 : i64, scratch_operands = 0 : i64, tpu.core_type = #tpu.core_type<tc>, window_params = [{transform_indices = @transform_0, window_bounds = array<i64: 128, 1>}, {transform_indices = @transform_1, window_bounds = array<i64: 128, 1>}, {transform_indices = @transform_2, window_bounds = array<i64: 128, 1>}, {pipeline_mode = #tpu.pipeline_mode<synchronous>, transform_indices = @transform_3, window_bounds = array<i64: 64, 128>}, {pipeline_mode = #tpu.pipeline_mode<synchronous>, transform_indices = @transform_4, window_bounds = array<i64: 16, 128>}, {transform_indices = @transform_5, window_bounds = array<i64: 128, 1>}]} {
    %c0 = arith.constant 0 : index
    %c0_0 = arith.constant 0 : index
    %0 = vector.load %arg1[%c0, %c0_0] : memref<128x1xi32, #tpu.memory_space<vmem>>, vector<128x1xi32>
    %1 = tpu.iota {dimensions = array<i32: 1>} : vector<128x64xi32>
    %2 = vector.broadcast %0 : vector<128x1xi32> to vector<128x64xi32>
    %3 = arith.cmpi eq, %2, %1 : vector<128x64xi32>
    %4 = arith.extui %3 : vector<128x64xi1> to vector<128x64xi32>
    %5 = arith.sitofp %4 : vector<128x64xi32> to vector<128x64xf32>
    %6 = arith.truncf %5 : vector<128x64xf32> to vector<128x64xbf16>
    %c0_1 = arith.constant 0 : index
    %c0_2 = arith.constant 0 : index
    %7 = vector.load %arg4[%c0_1, %c0_2] : memref<64x128xbf16, #tpu.memory_space<vmem>>, vector<64x128xbf16>
    %cst = arith.constant dense<0.000000e+00> : vector<128x128xf32>
    %8 = tpu.matmul %6, %7, %cst {dimension_numbers = #tpu.dot_dimension_numbers<[1], [0], [0], [1], [0, 0, 1, 1], [], []>} : vector<128x64xbf16>, vector<64x128xbf16>, vector<128x128xf32> -> vector<128x128xf32>
    %c0_3 = arith.constant 0 : index
    %c0_4 = arith.constant 0 : index
    %9 = vector.load %arg2[%c0_3, %c0_4] : memref<128x1xi32, #tpu.memory_space<vmem>>, vector<128x1xi32>
    %10 = tpu.iota {dimensions = array<i32: 1>} : vector<128x16xi32>
    %11 = vector.broadcast %9 : vector<128x1xi32> to vector<128x16xi32>
    %12 = arith.cmpi eq, %11, %10 : vector<128x16xi32>
    %13 = arith.extui %12 : vector<128x16xi1> to vector<128x16xi32>
    %14 = arith.sitofp %13 : vector<128x16xi32> to vector<128x16xf32>
    %15 = arith.truncf %14 : vector<128x16xf32> to vector<128x16xbf16>
    %c0_5 = arith.constant 0 : index
    %c0_6 = arith.constant 0 : index
    %16 = vector.load %arg5[%c0_5, %c0_6] : memref<16x128xbf16, #tpu.memory_space<vmem>>, vector<16x128xbf16>
    %cst_7 = arith.constant dense<0.000000e+00> : vector<128x128xf32>
    %17 = tpu.matmul %15, %16, %cst_7 {dimension_numbers = #tpu.dot_dimension_numbers<[1], [0], [0], [1], [0, 0, 1, 1], [], []>} : vector<128x16xbf16>, vector<16x128xbf16>, vector<128x128xf32> -> vector<128x128xf32>
    %c0_8 = arith.constant 0 : index
    %c0_9 = arith.constant 0 : index
    %18 = vector.load %arg3[%c0_8, %c0_9] : memref<128x1xi32, #tpu.memory_space<vmem>>, vector<128x1xi32>
    %19 = tpu.iota {dimensions = array<i32: 1>} : vector<128x64xi32>
    %20 = vector.broadcast %18 : vector<128x1xi32> to vector<128x64xi32>
    %21 = arith.cmpi eq, %20, %19 : vector<128x64xi32>
    %22 = arith.extui %21 : vector<128x64xi1> to vector<128x64xi32>
    %23 = arith.sitofp %22 : vector<128x64xi32> to vector<128x64xf32>
    %24 = arith.truncf %23 : vector<128x64xf32> to vector<128x64xbf16>
    %c0_10 = arith.constant 0 : index
    %c0_11 = arith.constant 0 : index
    %25 = vector.load %arg4[%c0_10, %c0_11] : memref<64x128xbf16, #tpu.memory_space<vmem>>, vector<64x128xbf16>
    %cst_12 = arith.constant dense<0.000000e+00> : vector<128x128xf32>
    %26 = tpu.matmul %24, %25, %cst_12 {dimension_numbers = #tpu.dot_dimension_numbers<[1], [0], [0], [1], [0, 0, 1, 1], [], []>} : vector<128x64xbf16>, vector<64x128xbf16>, vector<128x128xf32> -> vector<128x128xf32>
    %27 = arith.addf %8, %17 : vector<128x128xf32>
    %28 = arith.subf %27, %26 : vector<128x128xf32>
    %29 = arith.mulf %28, %28 : vector<128x128xf32>
    %cst_13 = arith.constant dense<0.000000e+00> : vector<128xf32>
    %30 = vector.multi_reduction <add>, %29, %cst_13 [1] : vector<128x128xf32> to vector<128xf32>
    %31 = vector.shape_cast %30 : vector<128xf32> to vector<128x1xf32>
    %32 = math.sqrt %31 : vector<128x1xf32>
    %cst_14 = arith.constant 0.000000e+00 : f32
    %33 = vector.broadcast %cst_14 : f32 to vector<128x1xf32>
    %34 = arith.subf %33, %32 : vector<128x1xf32>
    %c0_15 = arith.constant 0 : index
    %c0_16 = arith.constant 0 : index
    %35 = vector.load %arg6[%c0_15, %c0_16] : memref<128x1xf32, #tpu.memory_space<vmem>>, vector<128x1xf32>
    tpu.vector_store %arg6[%c0_15, %c0_16], %34 {strides = array<i32>} : memref<128x1xf32, #tpu.memory_space<vmem>>, vector<128x1xf32>,
    return
  }
  func.func @transform_0(%arg0: i32) -> (i32, i32) {
    %c0_i32 = arith.constant 0 : i32
    %c0_i32_0 = arith.constant 0 : i32
    return %arg0, %c0_i32 : i32, i32
  }
  func.func @transform_1(%arg0: i32) -> (i32, i32) {
    %c0_i32 = arith.constant 0 : i32
    %c0_i32_0 = arith.constant 0 : i32
    return %arg0, %c0_i32 : i32, i32
  }
  func.func @transform_2(%arg0: i32) -> (i32, i32) {
    %c0_i32 = arith.constant 0 : i32
    %c0_i32_0 = arith.constant 0 : i32
    return %arg0, %c0_i32 : i32, i32
  }
  func.func @transform_3(%arg0: i32) -> (i32, i32) {
    %c0_i32 = arith.constant 0 : i32
    %c0_i32_0 = arith.constant 0 : i32
    %c0_i32_1 = arith.constant 0 : i32
    return %c0_i32, %c0_i32_0 : i32, i32
  }
  func.func @transform_4(%arg0: i32) -> (i32, i32) {
    %c0_i32 = arith.constant 0 : i32
    %c0_i32_0 = arith.constant 0 : i32
    %c0_i32_1 = arith.constant 0 : i32
    return %c0_i32, %c0_i32_0 : i32, i32
  }
  func.func @transform_5(%arg0: i32) -> (i32, i32) {
    %c0_i32 = arith.constant 0 : i32
    %c0_i32_0 = arith.constant 0 : i32
    return %arg0, %c0_i32 : i32, i32
  }
}

</mosaic_0001>

<bundles_post_ra>
// kernel: tpu_custom_call.1
= control target key start
LH: loop header
LB: loop body
LE: loop exit
PB: predicated region body
PF: predicated region fallthrough
CT: control target
= control target key end

     0   :  { %s1627_s18 = smov 0   ;;  %s1899_s0 = inlined_call_operand.vmem [shape: s32[384,1], index: 0, kind: input, shape index: {}]   ;;  %s1900_s1 = inlined_call_operand.vmem [shape: s32[384,1], index: 1, kind: input, shape index: {}]   ;;  %s1901_s2 = inlined_call_operand.vmem [shape: s32[384,1], index: 2, kind: input, shape index: {}]   ;;  %s1902_s3 = inlined_call_operand.vmem [shape: bf16[64,128], index: 3, kind: input, shape index: {}]   ;;  %s1903_s4 = inlined_call_operand.vmem [shape: bf16[16,128], index: 4, kind: input, shape index: {}]   ;;  %s1904_s5 = inlined_call_operand.vmem [shape: f32[384,1], index: 5, kind: output, shape index: {}]  }
   0x1 LB: > { %s1329_s19 = sadd.s32 4294967295, %s1593_s18   ;;  %p1333_p0 = scmp.ge.s32.totalorder %s1593_s18, 1  ;;  %s1593_s18 = sphi %s1627_s18, %s15_s18  }
   0x2   : > { %p210_p1 = scmp.lt.s32.totalorder %s1593_s18, 4 }
   0x4   : > { %p211_p2 = pnand %p1333_p0, %p210_p1 }
   0x5   : > { %s1334_s20 = sshll.u32 (!%p211_p2), %s1329_s19, 4  ;;  %v1595_v0 = vmov (!%p211_p2), 0   ;;  %v1550_v11 = vld [vmem:[%s1903_s4] sm:$0xff] (!%p211_p2)   ;;  %v289_v51 = vlaneseq (!%p211_p2)  ;;  %vm531_vm4 = vcmask (!%p211_p2), 130048   ;;  %v1596_v57 = vmov (!%p211_p2), 0.0  }
   0x6   : > { %214 = sbr.rel (%p211_p2) target bundleno = 624 (0x270), region = 40  ;;  %1549 = vset.pattern.permute.xlu1 (!%p211_p2), %v1595_v0  ;;  %1548 = vset.pattern.permute.xlu0 (!%p211_p2), %v1595_v0  ;;  %p249_p3 = scmp.lt.s32.totalorder (!%p211_p2), %s1334_s20, 47  ;;  %v1663_v16 = vld [vmem:[%s1902_s3] sm:$0xff] (!%p211_p2)  }
   0x7   : > { %1454 = vmatprep.subr.bf16.mxu0 (!%p211_p2), %v1550_v11  ;;  %1520 = vmatprep.subr.bf16.mxu1 (!%p211_p2), %v1550_v11  ;;  %v1713_v52 = vand.u32 (!%p211_p2), 127, %v289_v51 }
   0x8   : > { %1455 = vmatpush3.bf16.msra.mxu0 (!%p211_p2), %v1550_v11  ;;  %1521 = vmatpush3.bf16.msra.mxu1 (!%p211_p2), %v1550_v11 }
   0x9   : > { %1496 = vmatprep.subr.bf16.mxu0 (!%p211_p2), %v1663_v16  ;;  %1472 = vmatprep.subr.bf16.mxu1 (!%p211_p2), %v1663_v16 }
   0xd   : > { %s1906_s20 = smov (!%p249_p3, %s1334_s20), 47 }
   0xe   : > { %s1635_s21 = sshll.u32 %s1906_s20, 3 }
   0xf   : > { %s1641_s24 = scalar_lea.vmem %s1900_s1, %s1635_s21  ;;  %s1673_s6 = scalar_lea.vmem %s1899_s0, %s1635_s21 }
  0x10   : > { %v405_v1 = vld [vmem:[%s1641_s24 + $0x10] sm:$0xff]  ;;  %v403_v2 = vld [vmem:[%s1641_s24] sm:$0xff]  ;;  %v406_v3 = vld [vmem:[%s1641_s24 + $0x18] sm:$0xff]  ;;  %s1683_s9 = scalar_lea.vmem %s1901_s2, %s1635_s21  ;;  %s1862_s19 = scalar_lea.vmem %s1904_s5, %s1635_s21 }
  0x11   : > { %426 = vperm.xlu1 %1549, %v405_v1   ;;  %420 = vperm.xlu0 %1548, %v403_v2   ;;  %v404_v4 = vld [vmem:[%s1641_s24 + $0x8] sm:$0xff]  ;;  %v411_v6 = vld [vmem:[%s1641_s24 + $0x40] sm:$0xff]  ;;  %v414_v7 = vld [vmem:[%s1641_s24 + $0x58] sm:$0xff] }
  0x12   : > { %v412_v5 = vld [vmem:[%s1641_s24 + $0x48] sm:$0xff]  ;;  %v413_v8 = vld [vmem:[%s1641_s24 + $0x50] sm:$0xff]  ;;  %v407_v10 = vld [vmem:[%s1641_s24 + $0x20] sm:$0xff] }
  0x13   : > { %v408_v9 = vld [vmem:[%s1641_s24 + $0x28] sm:$0xff]  ;;  %v410_v12 = vld [vmem:[%s1641_s24 + $0x38] sm:$0xff]  ;;  %v409_v13 = vld [vmem:[%s1641_s24 + $0x30] sm:$0xff] }
  0x14   : > { %v416_v14 = vld [vmem:[%s1641_s24 + $0x68] sm:$0xff]  ;;  %v415_v15 = vld [vmem:[%s1641_s24 + $0x60] sm:$0xff]  ;;  %v418_v17 = vld [vmem:[%s1641_s24 + $0x78] sm:$0xff] }
  0x15   : > { %429 = vperm.xlu1 %1549, %v406_v3   ;;  %423 = vperm.xlu0 %1548, %v404_v4   ;;  %v417_v18 = vld [vmem:[%s1641_s24 + $0x70] sm:$0xff]  ;;  %v274_v19 = vld [vmem:[%s1673_s6 + $0x8] sm:$0xff]  ;;  %v273_v20 = vld [vmem:[%s1673_s6] sm:$0xff] }
  0x16   : > { %v276_v21 = vld [vmem:[%s1673_s6 + $0x18] sm:$0xff]  ;;  %v275_v22 = vld [vmem:[%s1673_s6 + $0x10] sm:$0xff]  ;;  %v654_v23 = vld [vmem:[%s1683_s9 + $0x8] sm:$0xff] }
  0x17   : > { %v653_v24 = vld [vmem:[%s1683_s9] sm:$0xff]  ;;  %v656_v25 = vld [vmem:[%s1683_s9 + $0x18] sm:$0xff]  ;;  %v655_v26 = vld [vmem:[%s1683_s9 + $0x10] sm:$0xff] }
  0x18   : > { %v278_v27 = vld [vmem:[%s1673_s6 + $0x28] sm:$0xff]  ;;  %v277_v28 = vld [vmem:[%s1673_s6 + $0x20] sm:$0xff]  ;;  %v280_v29 = vld [vmem:[%s1673_s6 + $0x38] sm:$0xff] }
  0x19   : > { %447 = vperm.xlu1 %1549, %v412_v5   ;;  %444 = vperm.xlu0 %1548, %v411_v6   ;;  %v279_v30 = vld [vmem:[%s1673_s6 + $0x30] sm:$0xff]  ;;  %v658_v31 = vld [vmem:[%s1683_s9 + $0x28] sm:$0xff]  ;;  %v657_v32 = vld [vmem:[%s1683_s9 + $0x20] sm:$0xff] }
  0x1a   : > { %v660_v33 = vld [vmem:[%s1683_s9 + $0x38] sm:$0xff]  ;;  %v659_v34 = vld [vmem:[%s1683_s9 + $0x30] sm:$0xff]  ;;  %v282_v35 = vld [vmem:[%s1673_s6 + $0x48] sm:$0xff] }
  0x1b   : > { %v281_v36 = vld [vmem:[%s1673_s6 + $0x40] sm:$0xff]  ;;  %v284_v37 = vld [vmem:[%s1673_s6 + $0x58] sm:$0xff]  ;;  %v283_v38 = vld [vmem:[%s1673_s6 + $0x50] sm:$0xff] }
  0x1c   : > { %v662_v39 = vld [vmem:[%s1683_s9 + $0x48] sm:$0xff]  ;;  %v661_v40 = vld [vmem:[%s1683_s9 + $0x40] sm:$0xff]  ;;  %v664_v41 = vld [vmem:[%s1683_s9 + $0x58] sm:$0xff] }
  0x1d   : > { %453 = vperm.xlu1 %1549, %v414_v7   ;;  %450 = vperm.xlu0 %1548, %v413_v8   ;;  %v663_v42 = vld [vmem:[%s1683_s9 + $0x50] sm:$0xff]  ;;  %v286_v43 = vld [vmem:[%s1673_s6 + $0x68] sm:$0xff]  ;;  %v285_v44 = vld [vmem:[%s1673_s6 + $0x60] sm:$0xff] }
  0x1e   : > { %v288_v45 = vld [vmem:[%s1673_s6 + $0x78] sm:$0xff]  ;;  %v287_v46 = vld [vmem:[%s1673_s6 + $0x70] sm:$0xff]  ;;  %v666_v47 = vld [vmem:[%s1683_s9 + $0x68] sm:$0xff] }
  0x1f   : > { %v665_v48 = vld [vmem:[%s1683_s9 + $0x60] sm:$0xff]  ;;  %v668_v49 = vld [vmem:[%s1683_s9 + $0x78] sm:$0xff]  ;;  %v667_v50 = vld [vmem:[%s1683_s9 + $0x70] sm:$0xff] }
  0x20   : > { %v1552_v2 = vld [vmem:[%s1902_s3 + $0x8] sm:$0xff]   ;;  %v1553_v8 = vld [vmem:[%s1902_s3 + $0x10] sm:$0xff]  }
  0x21   : > { %435 = vperm.xlu1 %1549, %v408_v9   ;;  %432 = vperm.xlu0 %1548, %v407_v10  }
  0x25   : > { %441 = vperm.xlu1 %1549, %v410_v12   ;;  %438 = vperm.xlu0 %1548, %v409_v13  }
  0x29   : > { %459 = vperm.xlu1 %1549, %v416_v14   ;;  %456 = vperm.xlu0 %1548, %v415_v15   ;;  %v1554_v14 = vld [vmem:[%s1902_s3 + $0x18] sm:$0xff]  }
  0x2d   : > { %465 = vperm.xlu1 %1549, %v418_v17   ;;  %462 = vperm.xlu0 %1548, %v417_v18  }
  0x31   : > { %295 = vperm.xlu1 %1549, %v274_v19   ;;  %292 = vperm.xlu0 %1548, %v273_v20  }
  0x35   : > { %301 = vperm.xlu1 %1549, %v276_v21   ;;  %298 = vperm.xlu0 %1548, %v275_v22  }
  0x39   : > { %673 = vperm.xlu1 %1549, %v654_v23   ;;  %670 = vperm.xlu0 %1548, %v653_v24  }
  0x3d   : > { %679 = vperm.xlu1 %1549, %v656_v25   ;;  %676 = vperm.xlu0 %1548, %v655_v26  }
  0x41   : > { %307 = vperm.xlu1 %1549, %v278_v27   ;;  %304 = vperm.xlu0 %1548, %v277_v28  }
  0x45   : > { %313 = vperm.xlu1 %1549, %v280_v29   ;;  %310 = vperm.xlu0 %1548, %v279_v30  }
  0x49   : > { %685 = vperm.xlu1 %1549, %v658_v31   ;;  %682 = vperm.xlu0 %1548, %v657_v32  }
  0x4d   : > { %691 = vperm.xlu1 %1549, %v660_v33   ;;  %688 = vperm.xlu0 %1548, %v659_v34  }
  0x51   : > { %319 = vperm.xlu1 %1549, %v282_v35   ;;  %316 = vperm.xlu0 %1548, %v281_v36  }
  0x55   : > { %325 = vperm.xlu1 %1549, %v284_v37   ;;  %322 = vperm.xlu0 %1548, %v283_v38  }
  0x59   : > { %697 = vperm.xlu1 %1549, %v662_v39   ;;  %694 = vperm.xlu0 %1548, %v661_v40  }
  0x5d   : > { %703 = vperm.xlu1 %1549, %v664_v41   ;;  %700 = vperm.xlu0 %1548, %v663_v42  }
  0x61   : > { %331 = vperm.xlu1 %1549, %v286_v43   ;;  %328 = vperm.xlu0 %1548, %v285_v44  }
  0x65   : > { %337 = vperm.xlu1 %1549, %v288_v45   ;;  %334 = vperm.xlu0 %1548, %v287_v46  }
  0x69   : > { %709 = vperm.xlu1 %1549, %v666_v47   ;;  %706 = vperm.xlu0 %1548, %v665_v48  }
  0x6d   : > { %715 = vperm.xlu1 %1549, %v668_v49   ;;  %712 = vperm.xlu0 %1548, %v667_v50  }
  0x90   : > { %v427_v53 = vpop.permute.xlu1 %426  ;;  %v421_v54 = vpop.permute.xlu0 %420 }
  0x91   : > { %vm469_vm0 = vcmp.eq.s32.totalorder %v427_v53, %v1713_v52  ;;  %vm467_vm1 = vcmp.eq.s32.totalorder %v421_v54, %v1713_v52 }
  0x92   : > { %v1360_v58 = vsel %vm469_vm0, 1.0, %v1596_v57  ;;  %v1358_v59 = vsel %vm467_vm1, 1.0, %v1596_v57 }
  0x94   : > { %v430_v55 = vpop.permute.xlu1 %429  ;;  %v424_v56 = vpop.permute.xlu0 %423 }
  0x95   : > { %vm470_vm2 = vcmp.eq.s32.totalorder %v430_v55, %v1713_v52  ;;  %vm468_vm3 = vcmp.eq.s32.totalorder %v424_v56, %v1713_v52 }
  0x96   : > { %v1361_v60 = vsel %vm470_vm2, 1.0, %v1596_v57  ;;  %v1359_v61 = vsel %vm468_vm3, 1.0, %v1596_v57  ;;  %vm797_vm3 = vcmask 523264  }
  0x97   : > { %v516_v62 = vpack.c.bf16 %v1361_v60, %v1360_v58  ;;  %v515_v63 = vpack.c.bf16 %v1359_v61, %v1358_v59 }
  0x98   : > { %v448_v0 = vpop.permute.xlu1 %447  ;;  %v445_v1 = vpop.permute.xlu0 %444 }
  0x99   : > { %vm476_vm5 = vcmp.eq.s32.totalorder %v448_v0, %v1713_v52  ;;  %vm475_vm6 = vcmp.eq.s32.totalorder %v445_v1, %v1713_v52  ;;  %1456 = vmatprep.mubr.msk.bf16.mxu0 %vm531_vm4, %v515_v63 }
  0x9a   : > { %v1367_v3 = vsel %vm476_vm5, 1.0, %v1596_v57  ;;  %v1366_v4 = vsel %vm475_vm6, 1.0, %v1596_v57  ;;  %1457 = vmatmul.mubr.msk.bf16.vlgmr.msra.gmra.mrb[0].mxu0 %vm531_vm4, %v516_v62 }
  0x9b   : > { %v519_v5 = vpack.c.bf16 %v1367_v3, %v1366_v4  ;;  %1497 = vmatpush3.bf16.msra.mxu0 %v1663_v16 }
  0x9c   : > { %v454_v6 = vpop.permute.xlu1 %453  ;;  %v451_v7 = vpop.permute.xlu0 %450  ;;  %1498 = vmatprep.subr.bf16.mxu0 %v1552_v2 }
  0x9d   : > { %vm478_vm7 = vcmp.eq.s32.totalorder %v454_v6, %v1713_v52  ;;  %vm477_vm8 = vcmp.eq.s32.totalorder %v451_v7, %v1713_v52  ;;  %1464 = vmatprep.mubr.msk.bf16.mxu1 %vm531_vm4, %v519_v5 }
  0x9e   : > { %v1369_v9 = vsel %vm478_vm7, 1.0, %v1596_v57  ;;  %v1368_v10 = vsel %vm477_vm8, 1.0, %v1596_v57 }
  0x9f   : > { %v520_v11 = vpack.c.bf16 %v1369_v9, %v1368_v10  ;;  %1499 = vmatpush3.bf16.msra.mxu0 %v1552_v2 }
  0xa0   : > { %v436_v12 = vpop.permute.xlu1 %435  ;;  %v433_v13 = vpop.permute.xlu0 %432  ;;  %1500 = vmatprep.subr.bf16.mxu0 %v1553_v8 }
  0xa1   : > { %vm472_vm9 = vcmp.eq.s32.totalorder %v436_v12, %v1713_v52  ;;  %vm471_vm10 = vcmp.eq.s32.totalorder %v433_v13, %v1713_v52  ;;  %1465 = vmatmul.mubr.msk.bf16.vlgmr.msra.gmra.mrb[0].mxu1 %vm531_vm4, %v520_v11 }
  0xa2   : > { %v1363_v15 = vsel %vm472_vm9, 1.0, %v1596_v57  ;;  %v1362_v17 = vsel %vm471_vm10, 1.0, %v1596_v57  ;;  %1473 = vmatpush3.bf16.msra.mxu1 %v1663_v16 }
  0xa3   : > { %v517_v18 = vpack.c.bf16 %v1363_v15, %v1362_v17  ;;  %1501 = vmatpush3.bf16.msra.mxu0 %v1553_v8  ;;  %1474 = vmatprep.subr.bf16.mxu1 %v1552_v2 }
  0xa4   : > { %v442_v19 = vpop.permute.xlu1 %441  ;;  %v439_v20 = vpop.permute.xlu0 %438  ;;  %1502 = vmatprep.subr.bf16.mxu0 %v1554_v14 }
  0xa5   : > { %vm474_vm11 = vcmp.eq.s32.totalorder %v442_v19, %v1713_v52  ;;  %vm473_vm12 = vcmp.eq.s32.totalorder %v439_v20, %v1713_v52  ;;  %1460 = vmatprep.mubr.msk.bf16.mxu0 %vm531_vm4, %v517_v18 }
  0xa6   : > { %v1365_v21 = vsel %vm474_vm11, 1.0, %v1596_v57  ;;  %v1364_v22 = vsel %vm473_vm12, 1.0, %v1596_v57  ;;  %1475 = vmatpush3.bf16.msra.mxu1 %v1552_v2 }
  0xa7   : > { %v518_v23 = vpack.c.bf16 %v1365_v21, %v1364_v22  ;;  %1503 = vmatpush3.bf16.msra.mxu0 %v1554_v14  ;;  %1476 = vmatprep.subr.bf16.mxu1 %v1553_v8 }
  0xa8   : > { %v460_v16 = vpop.permute.xlu1 %459  ;;  %v457_v24 = vpop.permute.xlu0 %456 }
  0xa9   : > { %vm480_vm13 = vcmp.eq.s32.totalorder %v460_v16, %v1713_v52  ;;  %vm479_vm14 = vcmp.eq.s32.totalorder %v457_v24, %v1713_v52  ;;  %1461 = vmatmul.mubr.msk.bf16.gmra.mrb[4].mxu0 %vm531_vm4, %v518_v23 }
  0xaa   : > { %v1371_v25 = vsel %vm480_vm13, 1.0, %v1596_v57  ;;  %v1370_v26 = vsel %vm479_vm14, 1.0, %v1596_v57  ;;  %1477 = vmatpush3.bf16.msra.mxu1 %v1553_v8 }
  0xab   : > { %v521_v27 = vpack.c.bf16 %v1371_v25, %v1370_v26  ;;  %1478 = vmatprep.subr.bf16.mxu1 %v1554_v14 }
  0xac   : > { %v466_v28 = vpop.permute.xlu1 %465  ;;  %v463_v29 = vpop.permute.xlu0 %462 }
  0xad   : > { %vm482_vm15 = vcmp.eq.s32.totalorder %v466_v28, %v1713_v52  ;;  %vm481_vm0 = vcmp.eq.s32.totalorder %v463_v29, %v1713_v52  ;;  %1468 = vmatprep.mubr.msk.bf16.mxu1 %vm531_vm4, %v521_v27 }
  0xae   : > { %v1373_v30 = vsel %vm482_vm15, 1.0, %v1596_v57  ;;  %v1372_v31 = vsel %vm481_vm0, 1.0, %v1596_v57  ;;  %1479 = vmatpush3.bf16.msra.mxu1 %v1554_v14 }
  0xaf   : > { %v522_v32 = vpack.c.bf16 %v1373_v30, %v1372_v31 }
  0xb0   : > { %v296_v33 = vpop.permute.xlu1 %295  ;;  %v293_v34 = vpop.permute.xlu0 %292 }
  0xb1   : > { %vm340_vm1 = vcmp.eq.s32.totalorder %v296_v33, %v1713_v52  ;;  %vm339_vm2 = vcmp.eq.s32.totalorder %v293_v34, %v1713_v52  ;;  %1469 = vmatmul.mubr.msk.bf16.gmra.mrb[4].mxu1 %vm531_vm4, %v522_v32 }
  0xb2   : > { %v1343_v35 = vsel %vm340_vm1, 1.0, %v1596_v57  ;;  %v1342_v36 = vsel %vm339_vm2, 1.0, %v1596_v57 }
  0xb3   : > { %v387_v37 = vpack.c.bf16 %v1343_v35, %v1342_v36 }
  0xb4   : > { %v302_v38 = vpop.permute.xlu1 %301  ;;  %v299_v39 = vpop.permute.xlu0 %298 }
  0xb5   : > { %vm342_vm5 = vcmp.eq.s32.totalorder %v302_v38, %v1713_v52  ;;  %vm341_vm6 = vcmp.eq.s32.totalorder %v299_v39, %v1713_v52  ;;  %1504 = vmatprep.mubr.msk.bf16.mxu0 %vm797_vm3, %v387_v37 }
  0xb6   : > { %v1345_v40 = vsel %vm342_vm5, 1.0, %v1596_v57  ;;  %v1344_v41 = vsel %vm341_vm6, 1.0, %v1596_v57 }
  0xb7   : > { %v388_v42 = vpack.c.bf16 %v1345_v40, %v1344_v41 }
  0xb8   : > { %v674_v43 = vpop.permute.xlu1 %673  ;;  %v671_v44 = vpop.permute.xlu0 %670 }
  0xb9   : > { %vm718_vm4 = vcmp.eq.s32.totalorder %v674_v43, %v1713_v52  ;;  %vm717_vm7 = vcmp.eq.s32.totalorder %v671_v44, %v1713_v52  ;;  %1505 = vmatmul.mubr.msk.bf16.vlgmr.msra.gmra.mrb[0].mxu0 %vm797_vm3, %v388_v42 }
  0xba   : > { %v1384_v45 = vsel %vm718_vm4, 1.0, %v1596_v57  ;;  %v1383_v46 = vsel %vm717_vm7, 1.0, %v1596_v57 }
  0xbb   : > { %v765_v47 = vpack.c.bf16 %v1384_v45, %v1383_v46 }
  0xbc   : > { %v680_v48 = vpop.permute.xlu1 %679  ;;  %v677_v49 = vpop.permute.xlu0 %676 }
  0xbd   : > { %vm720_vm8 = vcmp.eq.s32.totalorder %v680_v48, %v1713_v52  ;;  %vm719_vm9 = vcmp.eq.s32.totalorder %v677_v49, %v1713_v52  ;;  %1480 = vmatprep.mubr.msk.bf16.mxu1 %vm797_vm3, %v765_v47 }
  0xbe   : > { %v1386_v50 = vsel %vm720_vm8, 1.0, %v1596_v57  ;;  %v1385_v51 = vsel %vm719_vm9, 1.0, %v1596_v57 }
  0xbf   : > { %v766_v53 = vpack.c.bf16 %v1386_v50, %v1385_v51 }
  0xc0   : > { %v308_v54 = vpop.permute.xlu1 %307  ;;  %v305_v55 = vpop.permute.xlu0 %304 }
  0xc1   : > { %vm344_vm10 = vcmp.eq.s32.totalorder %v308_v54, %v1713_v52  ;;  %vm343_vm11 = vcmp.eq.s32.totalorder %v305_v55, %v1713_v52  ;;  %1481 = vmatmul.mubr.msk.bf16.vlgmr.msra.gmra.mrb[8].mxu1 %vm797_vm3, %v766_v53 }
  0xc2   : > { %v1347_v56 = vsel %vm344_vm10, 1.0, %v1596_v57  ;;  %v1346_v58 = vsel %vm343_vm11, 1.0, %v1596_v57 }
  0xc3   : > { %v389_v59 = vpack.c.bf16 %v1347_v56, %v1346_v58 }
  0xc4   : > { %v314_v60 = vpop.permute.xlu1 %313  ;;  %v311_v61 = vpop.permute.xlu0 %310 }
  0xc5   : > { %vm346_vm12 = vcmp.eq.s32.totalorder %v314_v60, %v1713_v52  ;;  %vm345_vm13 = vcmp.eq.s32.totalorder %v311_v61, %v1713_v52  ;;  %1508 = vmatprep.mubr.msk.bf16.mxu0 %vm797_vm3, %v389_v59 }
  0xc6   : > { %v1349_v62 = vsel %vm346_vm12, 1.0, %v1596_v57  ;;  %v1348_v63 = vsel %vm345_vm13, 1.0, %v1596_v57 }
  0xc7   : > { %v390_v0 = vpack.c.bf16 %v1349_v62, %v1348_v63 }
  0xc8   : > { %v686_v1 = vpop.permute.xlu1 %685  ;;  %v683_v2 = vpop.permute.xlu0 %682 }
  0xc9   : > { %vm722_vm14 = vcmp.eq.s32.totalorder %v686_v1, %v1713_v52  ;;  %vm721_vm15 = vcmp.eq.s32.totalorder %v683_v2, %v1713_v52  ;;  %1509 = vmatmul.mubr.msk.bf16.gmra.mrb[4].mxu0 %vm797_vm3, %v390_v0 }
  0xca   : > { %v1388_v3 = vsel %vm722_vm14, 1.0, %v1596_v57  ;;  %v1387_v4 = vsel %vm721_vm15, 1.0, %v1596_v57 }
  0xcb   : > { %v767_v5 = vpack.c.bf16 %v1388_v3, %v1387_v4 }
  0xcc   : > { %v692_v6 = vpop.permute.xlu1 %691  ;;  %v689_v7 = vpop.permute.xlu0 %688 }
  0xcd   : > { %vm724_vm0 = vcmp.eq.s32.totalorder %v692_v6, %v1713_v52  ;;  %vm723_vm1 = vcmp.eq.s32.totalorder %v689_v7, %v1713_v52  ;;  %1484 = vmatprep.mubr.msk.bf16.mxu1 %vm797_vm3, %v767_v5 }
  0xce   : > { %v1390_v8 = vsel %vm724_vm0, 1.0, %v1596_v57  ;;  %v1389_v9 = vsel %vm723_vm1, 1.0, %v1596_v57 }
  0xcf   : > { %v768_v10 = vpack.c.bf16 %v1390_v8, %v1389_v9 }
  0xd0   : > { %v320_v11 = vpop.permute.xlu1 %319  ;;  %v317_v12 = vpop.permute.xlu0 %316 }
  0xd1   : > { %vm348_vm2 = vcmp.eq.s32.totalorder %v320_v11, %v1713_v52  ;;  %vm347_vm5 = vcmp.eq.s32.totalorder %v317_v12, %v1713_v52  ;;  %1485 = vmatmul.mubr.msk.bf16.gmra.mrb[12].mxu1 %vm797_vm3, %v768_v10 }
  0xd2   : > { %v1351_v13 = vsel %vm348_vm2, 1.0, %v1596_v57  ;;  %v1350_v14 = vsel %vm347_vm5, 1.0, %v1596_v57 }
  0xd3   : > { %v391_v15 = vpack.c.bf16 %v1351_v13, %v1350_v14 }
  0xd4   : > { %v326_v17 = vpop.permute.xlu1 %325  ;;  %v323_v18 = vpop.permute.xlu0 %322 }
  0xd5   : > { %vm350_vm6 = vcmp.eq.s32.totalorder %v326_v17, %v1713_v52  ;;  %vm349_vm4 = vcmp.eq.s32.totalorder %v323_v18, %v1713_v52  ;;  %1512 = vmatprep.mubr.msk.bf16.mxu0 %vm797_vm3, %v391_v15 }
  0xd6   : > { %v1353_v19 = vsel %vm350_vm6, 1.0, %v1596_v57  ;;  %v1352_v20 = vsel %vm349_vm4, 1.0, %v1596_v57  ;;  %vm1232_vm6 = vcmask 7168  }
  0xd7   : > { %v392_v21 = vpack.c.bf16 %v1353_v19, %v1352_v20 }
  0xd8   : > { %v698_v22 = vpop.permute.xlu1 %697  ;;  %v695_v23 = vpop.permute.xlu0 %694 }
  0xd9   : > { %vm726_vm7 = vcmp.eq.s32.totalorder %v698_v22, %v1713_v52  ;;  %vm725_vm8 = vcmp.eq.s32.totalorder %v695_v23, %v1713_v52  ;;  %1513 = vmatmul.mubr.msk.bf16.gmra.mrb[8].mxu0 %vm797_vm3, %v392_v21 }
  0xda   : > { %v1392_v16 = vsel %vm726_vm7, 1.0, %v1596_v57  ;;  %v1391_v24 = vsel %vm725_vm8, 1.0, %v1596_v57 }
  0xdb   : > { %v769_v25 = vpack.c.bf16 %v1392_v16, %v1391_v24 }
  0xdc   : > { %v704_v26 = vpop.permute.xlu1 %703  ;;  %v701_v27 = vpop.permute.xlu0 %700 }
  0xdd   : > { %vm728_vm9 = vcmp.eq.s32.totalorder %v704_v26, %v1713_v52  ;;  %vm727_vm10 = vcmp.eq.s32.totalorder %v701_v27, %v1713_v52  ;;  %1488 = vmatprep.mubr.msk.bf16.mxu1 %vm797_vm3, %v769_v25 }
  0xde   : > { %v1394_v28 = vsel %vm728_vm9, 1.0, %v1596_v57  ;;  %v1393_v29 = vsel %vm727_vm10, 1.0, %v1596_v57 }
  0xdf   : > { %v770_v30 = vpack.c.bf16 %v1394_v28, %v1393_v29 }
  0xe0   : > { %v332_v31 = vpop.permute.xlu1 %331  ;;  %v329_v32 = vpop.permute.xlu0 %328 }
  0xe1   : > { %vm352_vm11 = vcmp.eq.s32.totalorder %v332_v31, %v1713_v52  ;;  %vm351_vm12 = vcmp.eq.s32.totalorder %v329_v32, %v1713_v52  ;;  %1489 = vmatmul.mubr.msk.bf16.gmra.mrb[16].mxu1 %vm797_vm3, %v770_v30 }
  0xe2   : > { %v1355_v33 = vsel %vm352_vm11, 1.0, %v1596_v57  ;;  %v1354_v34 = vsel %vm351_vm12, 1.0, %v1596_v57 }
  0xe3   : > { %v393_v35 = vpack.c.bf16 %v1355_v33, %v1354_v34 }
  0xe4   : > { %v338_v36 = vpop.permute.xlu1 %337  ;;  %v335_v37 = vpop.permute.xlu0 %334 }
  0xe5   : > { %vm354_vm13 = vcmp.eq.s32.totalorder %v338_v36, %v1713_v52  ;;  %vm353_vm14 = vcmp.eq.s32.totalorder %v335_v37, %v1713_v52  ;;  %1516 = vmatprep.mubr.msk.bf16.mxu0 %vm797_vm3, %v393_v35 }
  0xe6   : > { %v1357_v38 = vsel %vm354_vm13, 1.0, %v1596_v57  ;;  %v1356_v39 = vsel %vm353_vm14, 1.0, %v1596_v57 }
  0xe7   : > { %v394_v40 = vpack.c.bf16 %v1357_v38, %v1356_v39 }
  0xe8   : > { %v710_v41 = vpop.permute.xlu1 %709  ;;  %v707_v42 = vpop.permute.xlu0 %706 }
  0xe9   : > { %vm730_vm15 = vcmp.eq.s32.totalorder %v710_v41, %v1713_v52  ;;  %vm729_vm0 = vcmp.eq.s32.totalorder %v707_v42, %v1713_v52  ;;  %1517 = vmatmul.mubr.msk.bf16.gmra.mrb[12].mxu0 %vm797_vm3, %v394_v40 }
  0xea   : > { %v1396_v43 = vsel %vm730_vm15, 1.0, %v1596_v57  ;;  %v1395_v44 = vsel %vm729_vm0, 1.0, %v1596_v57 }
  0xeb   : > { %v771_v45 = vpack.c.bf16 %v1396_v43, %v1395_v44 }
  0xec   : > { %v716_v46 = vpop.permute.xlu1 %715  ;;  %v713_v47 = vpop.permute.xlu0 %712 }
  0xed   : > { %vm732_vm1 = vcmp.eq.s32.totalorder %v716_v46, %v1713_v52  ;;  %vm731_vm2 = vcmp.eq.s32.totalorder %v713_v47, %v1713_v52  ;;  %1492 = vmatprep.mubr.msk.bf16.mxu1 %vm797_vm3, %v771_v45 }
  0xee   : > { %v1398_v48 = vsel %vm732_vm1, 1.0, %v1596_v57  ;;  %v1397_v49 = vsel %vm731_vm2, 1.0, %v1596_v57 }
  0xef   : > { %v772_v50 = vpack.c.bf16 %v1398_v48, %v1397_v49 }
  0xf1   : > { %1493 = vmatmul.mubr.msk.bf16.gmra.mrb[20].mxu1 %vm797_vm3, %v772_v50 }
 0x174   : > { %v1466_v51 = vpop.f32.mrb[0].mxu1 }
 0x175   : > { %v622_v53 = vpop.f32.mrb[1].mxu1 }
 0x176   : > { %v1467_v54 = vpop.f32.mrb[2].mxu1 }
 0x177   : > { %v625_v55 = vpop.f32.mrb[3].mxu1 }
 0x184   : > { %v1846_v56 = vpop.f32.mrb[4].mxu1 }
 0x185   : > { %v1848_v58 = vpop.f32.mrb[5].mxu1 }
 0x186   : > { %v1850_v59 = vpop.f32.mrb[6].mxu1 }
 0x187   : > { %v1852_v52 = vpop.f32.mrb[7].mxu1 }
 0x18c   : > { %v1506_v60 = vpop.f32.mrb[0].mxu0 }
 0x18d   : > { %v977_v61 = vpop.f32.mrb[1].mxu0 }
 0x18e   : > { %v1507_v62 = vpop.f32.mrb[2].mxu0 }
 0x18f   : > { %v980_v63 = vpop.f32.mrb[3].mxu0 }
 0x194   : > { %v1482_v57 = vpop.f32.mrb[8].mxu1 }
 0x195   : > { %v1042_v0 = vsub.f32 %v1506_v60, %v1482_v57  ;;  %v856_v1 = vpop.f32.mrb[9].mxu1 }
 0x196   : > { %v1040_v2 = vsub.f32 %v977_v61, %v856_v1  ;;  %v1483_v3 = vpop.f32.mrb[10].mxu1 }
 0x197   : > { %v1058_v4 = vmul.f32 %v1042_v0, %v1042_v0  ;;  %v1043_v5 = vsub.f32 %v1507_v62, %v1483_v3  ;;  %v859_v6 = vpop.f32.mrb[11].mxu1 }
 0x198   : > { %v1041_v7 = vsub.f32 %v980_v63, %v859_v6  ;;  %v1056_v9 = vmul.f32 %v1040_v2, %v1040_v2 }
 0x199   : > { %1076 = vadd.xlane.f32.xlu0 %v1058_v4  ;;  %v1059_v13 = vmul.f32 %v1043_v5, %v1043_v5 }
 0x19a   : > { %v1057_v8 = vmul.f32 %v1041_v7, %v1041_v7 }
 0x19c   : > { %1074 = vadd.xlane.f32.xlu1 %v1057_v8  ;;  %v1510_v10 = vpop.f32.mrb[4].mxu0 }
 0x19d   : > { %1072 = vadd.xlane.f32.xlu0 %v1056_v9  ;;  %v993_v11 = vpop.f32.mrb[5].mxu0 }
 0x19e   : > { %v1511_v12 = vpop.f32.mrb[6].mxu0 }
 0x19f   : > { %v996_v14 = vpop.f32.mrb[7].mxu0 }
 0x1a1   : > { %1078 = vadd.xlane.f32.xlu0 %v1059_v13 }
 0x1a4   : > { %v1486_v15 = vpop.f32.mrb[12].mxu1 }
 0x1a5   : > { %v1046_v17 = vsub.f32 %v1510_v10, %v1486_v15  ;;  %v872_v18 = vpop.f32.mrb[13].mxu1 }
 0x1a6   : > { %v1044_v19 = vsub.f32 %v993_v11, %v872_v18  ;;  %v1487_v20 = vpop.f32.mrb[14].mxu1 }
 0x1a7   : > { %v1062_v21 = vmul.f32 %v1046_v17, %v1046_v17  ;;  %v1047_v22 = vsub.f32 %v1511_v12, %v1487_v20  ;;  %v875_v23 = vpop.f32.mrb[15].mxu1 }
 0x1a8   : > { %v1045_v16 = vsub.f32 %v996_v14, %v875_v23  ;;  %v1060_v25 = vmul.f32 %v1044_v19, %v1044_v19 }
 0x1a9   : > { %v1063_v24 = vmul.f32 %v1047_v22, %v1047_v22  ;;  %1084 = vadd.xlane.f32.xlu1 %v1062_v21 }
 0x1aa   : > { %v1061_v27 = vmul.f32 %v1045_v16, %v1045_v16 }
 0x1ab   : > { %1086 = vadd.xlane.f32.xlu0 %v1063_v24 }
 0x1ac   : > { %v1514_v26 = vpop.f32.mrb[8].mxu0 }
 0x1ad   : > { %v1018_v28 = vadd.f32 %v1514_v26, %v1466_v51  ;;  %1080 = vadd.xlane.f32.xlu1 %v1060_v25  ;;  %v1009_v29 = vpop.f32.mrb[9].mxu0 }
 0x1ae   : > { %v1010_v30 = vadd.f32 %v1009_v29, %v622_v53  ;;  %v1515_v31 = vpop.f32.mrb[10].mxu0 }
 0x1af   : > { %v1021_v32 = vadd.f32 %v1515_v31, %v1467_v54  ;;  %1082 = vadd.xlane.f32.xlu0 %v1061_v27  ;;  %v1012_v33 = vpop.f32.mrb[11].mxu0 }
 0x1b0   : > { %v1013_v34 = vadd.f32 %v1012_v33, %v625_v55 }
 0x1b4   : > { %v1490_v35 = vpop.f32.mrb[16].mxu1 }
 0x1b5   : > { %v1050_v36 = vsub.f32 %v1018_v28, %v1490_v35  ;;  %v888_v37 = vpop.f32.mrb[17].mxu1 }
 0x1b6   : > { %v1048_v38 = vsub.f32 %v1010_v30, %v888_v37  ;;  %v1491_v39 = vpop.f32.mrb[18].mxu1 }
 0x1b7   : > { %v1066_v40 = vmul.f32 %v1050_v36, %v1050_v36  ;;  %v1051_v41 = vsub.f32 %v1021_v32, %v1491_v39  ;;  %v891_v42 = vpop.f32.mrb[19].mxu1 }
 0x1b8   : > { %v1049_v43 = vsub.f32 %v1013_v34, %v891_v42  ;;  %v1064_v45 = vmul.f32 %v1048_v38, %v1048_v38 }
 0x1b9   : > { %v1067_v44 = vmul.f32 %v1051_v41, %v1051_v41  ;;  %1092 = vadd.xlane.f32.xlu1 %v1066_v40 }
 0x1ba   : > { %v1065_v47 = vmul.f32 %v1049_v43, %v1049_v43 }
 0x1bb   : > { %1094 = vadd.xlane.f32.xlu0 %v1067_v44 }
 0x1bc   : > { %v1518_v46 = vpop.f32.mrb[12].mxu0 }
 0x1bd   : > { %v1034_v48 = vadd.f32 %v1518_v46, %v1846_v56  ;;  %1088 = vadd.xlane.f32.xlu1 %v1064_v45  ;;  %v1025_v49 = vpop.f32.mrb[13].mxu0 }
 0x1be   : > { %v1026_v50 = vadd.f32 %v1025_v49, %v1848_v58  ;;  %v1519_v51 = vpop.f32.mrb[14].mxu0 }
 0x1bf   : > { %v1037_v53 = vadd.f32 %v1519_v51, %v1850_v59  ;;  %1090 = vadd.xlane.f32.xlu0 %v1065_v47  ;;  %v1028_v54 = vpop.f32.mrb[15].mxu0 }
 0x1c0   : > { %v1029_v55 = vadd.f32 %v1028_v54, %v1852_v52 }
 0x1c4   : > { %v1494_v60 = vpop.f32.mrb[20].mxu1 }
 0x1c5   : > { %v1054_v61 = vsub.f32 %v1034_v48, %v1494_v60  ;;  %v904_v62 = vpop.f32.mrb[21].mxu1 }
 0x1c6   : > { %v1052_v63 = vsub.f32 %v1026_v50, %v904_v62  ;;  %v1495_v57 = vpop.f32.mrb[22].mxu1 }
 0x1c7   : > { %v1055_v0 = vsub.f32 %v1037_v53, %v1495_v57  ;;  %v907_v1 = vpop.f32.mrb[23].mxu1  ;;  %v1070_v4 = vmul.f32 %v1054_v61, %v1054_v61 }
 0x1c8   : > { %v1068_v2 = vmul.f32 %v1052_v63, %v1052_v63  ;;  %v1053_v56 = vsub.f32 %v1029_v55, %v907_v1 }
 0x1c9   : > { %v1071_v58 = vmul.f32 %v1055_v0, %v1055_v0 }
 0x1ca   : > { %v1069_v3 = vmul.f32 %v1053_v56, %v1053_v56  ;;  %1096 = vadd.xlane.f32.xlu1 %v1068_v2 }
 0x1cc   : > { %1098 = vadd.xlane.f32.xlu0 %v1069_v3 }
 0x1ce   : > { %1100 = vadd.xlane.f32.xlu1 %v1070_v4 }
 0x1d0   : > { %1102 = vadd.xlane.f32.xlu0 %v1071_v58 }
 0x226   : > { %v1077_v59 = vpop.xlane.xlu0 %1076 }
 0x227   : > { %1555 = vrsqrt.f32 %v1077_v59  ;;  %vm1120_vm3 = vcmp.eq.f32.partialorder %v1077_v59, inf  ;;  %v1123_v9 = vand.u32 2147483648, %v1077_v59  ;;  %vm1122_vm5 = vcmp.eq.f32.partialorder %v1077_v59, 0.0 }
 0x229   : > { %v1075_v52 = vpop.xlane.xlu1 %1074 }
 0x22a   : > { %1557 = vrsqrt.f32 %v1075_v52  ;;  %v1073_v5 = vpop.xlane.xlu0 %1072  ;;  %vm1113_vm4 = vcmp.eq.f32.partialorder %v1075_v52, inf  ;;  %vm1115_vm7 = vcmp.eq.f32.partialorder %v1075_v52, 0.0  ;;  %v1116_v17 = vand.u32 2147483648, %v1075_v52 }
 0x22b   : > { %1559 = vrsqrt.f32 %v1073_v5  ;;  %vm1106_vm8 = vcmp.eq.f32.partialorder %v1073_v5, inf  ;;  %v1109_v21 = vand.u32 2147483648, %v1073_v5  ;;  %vm1108_vm9 = vcmp.eq.f32.partialorder %v1073_v5, 0.0 }
 0x22e   : > { %v1079_v6 = vpop.xlane.xlu0 %1078 }
 0x22f   : > { %1561 = vrsqrt.f32 %v1079_v6  ;;  %vm1127_vm10 = vcmp.eq.f32.partialorder %v1079_v6, inf  ;;  %v1130_v30 = vand.u32 2147483648, %v1079_v6  ;;  %vm1129_vm11 = vcmp.eq.f32.partialorder %v1079_v6, 0.0 }
 0x231   : > { %v1556_v7 = vpop.eup %1555 }
 0x232   : > { %v1119_v8 = vmul.f32 %v1556_v7, %v1077_v59 }
 0x234   : > { %v1558_v10 = vpop.eup %1557  ;;  %v1121_v11 = vsel %vm1120_vm3, %v1077_v59, %v1119_v8 }
 0x235   : > { %v1560_v12 = vpop.eup %1559  ;;  %v1124_v13 = vsel %vm1122_vm5, %v1123_v9, %v1121_v11  ;;  %v1112_v14 = vmul.f32 %v1558_v10, %v1075_v52 }
 0x236   : > { %v1218_v15 = vsub.f32 0.0, %v1124_v13  ;;  %v1105_v18 = vmul.f32 %v1560_v12, %v1073_v5  ;;  %v1085_v19 = vpop.xlane.xlu1 %1084 }
 0x237   : > { %v1114_v20 = vsel %vm1113_vm4, %v1075_v52, %v1112_v14  ;;  %1563 = vrsqrt.f32 %v1085_v19  ;;  %vm1148_vm12 = vcmp.eq.f32.partialorder %v1085_v19, inf  ;;  %v1151_v38 = vand.u32 2147483648, %v1085_v19 }
 0x238   : > { %1235 = vst.msk [vmem:[%s1862_s19 + $0x10] sm:$0xff] %vm1232_vm6, %v1218_v15  ;;  %v1117_v22 = vsel %vm1115_vm7, %v1116_v17, %v1114_v20  ;;  %v1107_v23 = vsel %vm1106_vm8, %v1073_v5, %v1105_v18  ;;  %v1087_v16 = vpop.xlane.xlu0 %1086  ;;  %vm1150_vm13 = vcmp.eq.f32.partialorder %v1085_v19, 0.0 }
 0x239   : > { %v1562_v24 = vpop.eup %1561  ;;  %v1217_v25 = vsub.f32 0.0, %v1117_v22  ;;  %v1110_v26 = vsel %vm1108_vm9, %v1109_v21, %v1107_v23  ;;  %1565 = vrsqrt.f32 %v1087_v16  ;;  %vm1155_vm14 = vcmp.eq.f32.partialorder %v1087_v16, inf }
 0x23a   : > { %v1216_v27 = vsub.f32 0.0, %v1110_v26  ;;  %v1126_v28 = vmul.f32 %v1562_v24, %v1079_v6  ;;  %v1081_v29 = vpop.xlane.xlu1 %1080  ;;  %v1158_v43 = vand.u32 2147483648, %v1087_v16  ;;  %vm1157_vm15 = vcmp.eq.f32.partialorder %v1087_v16, 0.0 }
 0x23b   : > { %1234 = vst.msk [vmem:[%s1862_s19 + $0x8] sm:$0xff] %vm1232_vm6, %v1217_v25  ;;  %1567 = vrsqrt.f32 %v1081_v29  ;;  %vm1134_vm0 = vcmp.eq.f32.partialorder %v1081_v29, inf  ;;  %v1137_v50 = vand.u32 2147483648, %v1081_v29  ;;  %vm1136_vm1 = vcmp.eq.f32.partialorder %v1081_v29, 0.0 }
 0x23c   : > { %1233 = vst.msk [vmem:[%s1862_s19] sm:$0xff] %vm1232_vm6, %v1216_v27  ;;  %v1128_v31 = vsel %vm1127_vm10, %v1079_v6, %v1126_v28  ;;  %v1083_v32 = vpop.xlane.xlu0 %1082 }
 0x23d   : > { %v1131_v33 = vsel %vm1129_vm11, %v1130_v30, %v1128_v31  ;;  %1569 = vrsqrt.f32 %v1083_v32  ;;  %vm1141_vm2 = vcmp.eq.f32.partialorder %v1083_v32, inf  ;;  %v1144_v61 = vand.u32 2147483648, %v1083_v32 }
 0x23e   : > { %v1219_v34 = vsub.f32 0.0, %v1131_v33  ;;  %vm1143_vm3 = vcmp.eq.f32.partialorder %v1083_v32, 0.0 }
 0x240   : > { %1236 = vst.msk [vmem:[%s1862_s19 + $0x18] sm:$0xff] %vm1232_vm6, %v1219_v34 }
 0x241   : > { %v1564_v35 = vpop.eup %1563 }
 0x242   : > { %v1147_v36 = vmul.f32 %v1564_v35, %v1085_v19 }
 0x243   : > { %v1566_v37 = vpop.eup %1565 }
 0x244   : > { %v1149_v39 = vsel %vm1148_vm12, %v1085_v19, %v1147_v36  ;;  %v1154_v40 = vmul.f32 %v1566_v37, %v1087_v16 }
 0x245   : > { %v1568_v41 = vpop.eup %1567  ;;  %v1152_v42 = vsel %vm1150_vm13, %v1151_v38, %v1149_v39 }
 0x246   : > { %v1222_v44 = vsub.f32 0.0, %v1152_v42  ;;  %v1156_v45 = vsel %vm1155_vm14, %v1087_v16, %v1154_v40  ;;  %v1133_v46 = vmul.f32 %v1568_v41, %v1081_v29  ;;  %v1093_v47 = vpop.xlane.xlu1 %1092 }
 0x247   : > { %v1570_v48 = vpop.eup %1569  ;;  %v1159_v49 = vsel %vm1157_vm15, %v1158_v43, %v1156_v45  ;;  %1571 = vrsqrt.f32 %v1093_v47  ;;  %vm1176_vm5 = vcmp.eq.f32.partialorder %v1093_v47, inf  ;;  %v1179_v58 = vand.u32 2147483648, %v1093_v47 }
 0x248   : > { %1239 = vst.msk [vmem:[%s1862_s19 + $0x30] sm:$0xff] %vm1232_vm6, %v1222_v44  ;;  %v1223_v51 = vsub.f32 0.0, %v1159_v49  ;;  %v1135_v53 = vsel %vm1134_vm0, %v1081_v29, %v1133_v46  ;;  %v1140_v54 = vmul.f32 %v1570_v48, %v1083_v32  ;;  %v1095_v55 = vpop.xlane.xlu0 %1094  ;;  %vm1178_vm4 = vcmp.eq.f32.partialorder %v1093_v47, 0.0 }
 0x249   : > { %v1138_v60 = vsel %vm1136_vm1, %v1137_v50, %v1135_v53  ;;  %1573 = vrsqrt.f32 %v1095_v55  ;;  %vm1183_vm7 = vcmp.eq.f32.partialorder %v1095_v55, inf  ;;  %v1186_v7 = vand.u32 2147483648, %v1095_v55 }
 0x24a   : > { %1240 = vst.msk [vmem:[%s1862_s19 + $0x38] sm:$0xff] %vm1232_vm6, %v1223_v51  ;;  %v1220_v62 = vsub.f32 0.0, %v1138_v60  ;;  %v1142_v63 = vsel %vm1141_vm2, %v1083_v32, %v1140_v54  ;;  %v1089_v57 = vpop.xlane.xlu1 %1088  ;;  %vm1185_vm8 = vcmp.eq.f32.partialorder %v1095_v55, 0.0 }
 0x24b   : > { %v1145_v0 = vsel %vm1143_vm3, %v1144_v61, %v1142_v63  ;;  %1575 = vrsqrt.f32 %v1089_v57  ;;  %vm1162_vm9 = vcmp.eq.f32.partialorder %v1089_v57, inf  ;;  %vm1164_vm10 = vcmp.eq.f32.partialorder %v1089_v57, 0.0 }
 0x24c   : > { %1237 = vst.msk [vmem:[%s1862_s19 + $0x20] sm:$0xff] %vm1232_vm6, %v1220_v62  ;;  %v1221_v1 = vsub.f32 0.0, %v1145_v0  ;;  %v1091_v2 = vpop.xlane.xlu0 %1090  ;;  %v1165_v13 = vand.u32 2147483648, %v1089_v57 }
 0x24d   : > { %1577 = vrsqrt.f32 %v1091_v2  ;;  %vm1169_vm11 = vcmp.eq.f32.partialorder %v1091_v2, inf  ;;  %v1172_v20 = vand.u32 2147483648, %v1091_v2  ;;  %vm1171_vm12 = vcmp.eq.f32.partialorder %v1091_v2, 0.0 }
 0x24e   : > { %1238 = vst.msk [vmem:[%s1862_s19 + $0x28] sm:$0xff] %vm1232_vm6, %v1221_v1 }
 0x251   : > { %v1572_v56 = vpop.eup %1571 }
 0x252   : > { %v1175_v3 = vmul.f32 %v1572_v56, %v1093_v47 }
 0x253   : > { %v1574_v4 = vpop.eup %1573 }
 0x254   : > { %v1177_v59 = vsel %vm1176_vm5, %v1093_v47, %v1175_v3  ;;  %v1182_v52 = vmul.f32 %v1574_v4, %v1095_v55 }
 0x255   : > { %v1576_v5 = vpop.eup %1575  ;;  %v1180_v6 = vsel %vm1178_vm4, %v1179_v58, %v1177_v59 }
 0x256   : > { %v1226_v8 = vsub.f32 0.0, %v1180_v6  ;;  %v1184_v9 = vsel %vm1183_vm7, %v1095_v55, %v1182_v52  ;;  %v1161_v10 = vmul.f32 %v1576_v5, %v1089_v57 }
 0x257   : > { %v1578_v11 = vpop.eup %1577  ;;  %v1187_v12 = vsel %vm1185_vm8, %v1186_v7, %v1184_v9  ;;  %v1097_v14 = vpop.xlane.xlu1 %1096 }
 0x258   : > { %1243 = vst.msk [vmem:[%s1862_s19 + $0x50] sm:$0xff] %vm1232_vm6, %v1226_v8  ;;  %v1227_v15 = vsub.f32 0.0, %v1187_v12  ;;  %v1163_v17 = vsel %vm1162_vm9, %v1089_v57, %v1161_v10  ;;  %v1168_v18 = vmul.f32 %v1578_v11, %v1091_v2  ;;  %1579 = vrsqrt.f32 %v1097_v14 }
 0x259   : > { %v1166_v19 = vsel %vm1164_vm10, %v1165_v13, %v1163_v17  ;;  %v1099_v21 = vpop.xlane.xlu0 %1098  ;;  %vm1190_vm13 = vcmp.eq.f32.partialorder %v1097_v14, inf  ;;  %v1193_v30 = vand.u32 2147483648, %v1097_v14  ;;  %vm1192_vm14 = vcmp.eq.f32.partialorder %v1097_v14, 0.0 }
 0x25a   : > { %1244 = vst.msk [vmem:[%s1862_s19 + $0x58] sm:$0xff] %vm1232_vm6, %v1227_v15  ;;  %v1224_v22 = vsub.f32 0.0, %v1166_v19  ;;  %v1170_v23 = vsel %vm1169_vm11, %v1091_v2, %v1168_v18  ;;  %1581 = vrsqrt.f32 %v1099_v21  ;;  %vm1197_vm15 = vcmp.eq.f32.partialorder %v1099_v21, inf }
 0x25b   : > { %v1173_v16 = vsel %vm1171_vm12, %v1172_v20, %v1170_v23  ;;  %v1101_v24 = vpop.xlane.xlu1 %1100  ;;  %v1200_v35 = vand.u32 2147483648, %v1099_v21  ;;  %vm1199_vm0 = vcmp.eq.f32.partialorder %v1099_v21, 0.0 }
 0x25c   : > { %1241 = vst.msk [vmem:[%s1862_s19 + $0x40] sm:$0xff] %vm1232_vm6, %v1224_v22  ;;  %v1225_v25 = vsub.f32 0.0, %v1173_v16  ;;  %1583 = vrsqrt.f32 %v1101_v24  ;;  %vm1204_vm1 = vcmp.eq.f32.partialorder %v1101_v24, inf  ;;  %v1207_v41 = vand.u32 2147483648, %v1101_v24 }
 0x25d   : > { %v1103_v26 = vpop.xlane.xlu0 %1102  ;;  %vm1206_vm2 = vcmp.eq.f32.partialorder %v1101_v24, 0.0 }
 0x25e   : > { %1242 = vst.msk [vmem:[%s1862_s19 + $0x48] sm:$0xff] %vm1232_vm6, %v1225_v25  ;;  %1585 = vrsqrt.f32 %v1103_v26  ;;  %vm1211_vm3 = vcmp.eq.f32.partialorder %v1103_v26, inf  ;;  %v1214_v46 = vand.u32 2147483648, %v1103_v26  ;;  %vm1213_vm5 = vcmp.eq.f32.partialorder %v1103_v26, 0.0 }
 0x262   : > { %v1580_v27 = vpop.eup %1579 }
 0x263   : > { %v1189_v28 = vmul.f32 %v1580_v27, %v1097_v14 }
 0x264   : > { %v1582_v29 = vpop.eup %1581 }
 0x265   : > { %v1191_v31 = vsel %vm1190_vm13, %v1097_v14, %v1189_v28  ;;  %v1196_v32 = vmul.f32 %v1582_v29, %v1099_v21 }
 0x266   : > { %v1584_v33 = vpop.eup %1583  ;;  %v1194_v34 = vsel %vm1192_vm14, %v1193_v30, %v1191_v31 }
 0x267   : > { %v1228_v36 = vsub.f32 0.0, %v1194_v34  ;;  %v1198_v37 = vsel %vm1197_vm15, %v1099_v21, %v1196_v32  ;;  %v1203_v38 = vmul.f32 %v1584_v33, %v1101_v24 }
 0x268   : > { %v1586_v39 = vpop.eup %1585  ;;  %v1201_v40 = vsel %vm1199_vm0, %v1200_v35, %v1198_v37 }
 0x269   : > { %1245 = vst.msk [vmem:[%s1862_s19 + $0x60] sm:$0xff] %vm1232_vm6, %v1228_v36  ;;  %v1229_v42 = vsub.f32 0.0, %v1201_v40  ;;  %v1205_v43 = vsel %vm1204_vm1, %v1101_v24, %v1203_v38  ;;  %v1210_v44 = vmul.f32 %v1586_v39, %v1103_v26 }
 0x26a   : > { %v1208_v45 = vsel %vm1206_vm2, %v1207_v41, %v1205_v43 }
 0x26b   : > { %1246 = vst.msk [vmem:[%s1862_s19 + $0x68] sm:$0xff] %vm1232_vm6, %v1229_v42  ;;  %v1230_v47 = vsub.f32 0.0, %v1208_v45  ;;  %v1212_v48 = vsel %vm1211_vm3, %v1103_v26, %v1210_v44 }
 0x26c   : > { %v1215_v49 = vsel %vm1213_vm5, %v1214_v46, %v1212_v48 }
 0x26d   : > { %1247 = vst.msk [vmem:[%s1862_s19 + $0x70] sm:$0xff] %vm1232_vm6, %v1230_v47  ;;  %v1231_v50 = vsub.f32 0.0, %v1215_v49 }
 0x26f   : > { %1248 = vst.msk [vmem:[%s1862_s19 + $0x78] sm:$0xff] %vm1232_vm6, %v1231_v50 }
 0x270 PF: > { %s15_s18 = sadd.s32 1, %s1593_s18  }
 0x271   : > { %p12_p4 = scmp.ge.s32.totalorder %s15_s18, 5  }
 0x273   :  { %14 = sbr.rel (!%p12_p4) target bundleno = 1 (0x1), region = 76 }

</bundles_post_ra>
